<compile_context>
chip_gen: v6e
topology: v6e:2x2x1
jax: 0.10.0
libtpu: 0.0.40
codegen_flags: <defaults>
</compile_context>

<pallas_src>
import jax
import jax.numpy as jnp
import numpy as np
from jax.experimental import pallas as pl
from jax.experimental.pallas import tpu as pltpu

LN_EPS = 1e-5  # nn.LayerNorm default eps


def _fused_agg_ln_proj_kernel(nw_ref, gamma_ref, beta_ref, pw_ref, pb_ref,
                              feats_ref, out_ref, acc_ref):
    """Weighted layer sum (grid reduction) -> LayerNorm(H) -> Linear(H->Dp).

    nw_ref   : SMEM (L,)            softmax-normalized layer weights (prefetch)
    gamma_ref: VMEM (1, H)          LayerNorm scale
    beta_ref : VMEM (1, H)          LayerNorm shift
    pw_ref   : VMEM (H, Dp) bf16    projection weight (torch weight.T, D padded)
    pb_ref   : VMEM (1, Dp)         projection bias (D padded)
    feats_ref: VMEM (1, tile_m, H)  one layer's slice of the row tile
    out_ref  : VMEM (tile_m, Dp)    projected features (resident across l)
    acc_ref  : VMEM (tile_m, H) f32 scratch accumulator
    """
    l = pl.program_id(1)

    @pl.when(l == 0)
    def _init():
        # Fold zero-init into the first layer step: saves one full (tile_m, H)
        # VMEM store + reload per row tile.
        acc_ref[...] = nw_ref[0] * feats_ref[0].astype(jnp.float32)

    @pl.when(l > 0)
    def _accumulate():
        # Weighted accumulation over layers (SMEM scalar * vector tile, VPU).
        acc_ref[...] = acc_ref[...] + nw_ref[l] * feats_ref[0].astype(jnp.float32)

    @pl.when(l == pl.num_programs(1) - 1)
    def _finalize():
        acc = acc_ref[...]
        # LayerNorm over the hidden dimension (f32, two-pass variance for
        # numerical fidelity vs torch).
        # TODO(synk): if H ever needs zero-padding to a multiple of 128 for a
        # real config, mean/var must divide by the true H and mask padded lanes.
        mean = jnp.mean(acc, axis=-1, keepdims=True)
        var = jnp.mean(jnp.square(acc - mean), axis=-1, keepdims=True)
        normed = (acc - mean) * jax.lax.rsqrt(var + LN_EPS)
        normed = normed * gamma_ref[...] + beta_ref[...]
        # Projection on the MXU: bf16 operands, f32 accumulation.
        out_ref[...] = (
            jnp.dot(normed.astype(jnp.bfloat16), pw_ref[...],
                    preferred_element_type=jnp.float32)
            + pb_ref[...]
        ).astype(out_ref.dtype)


def _round_up(x, m):
    return ((x + m - 1) // m) * m


def _device_generation():
    try:
        kind = jax.devices()[0].device_kind.lower()
    except Exception:
        return "unknown"
    for tag in ("v5", "v6", "v7"):
        if tag in kind:
            return tag
    return "unknown"


def _generation_config():
    """Generation-aware tile / VMEM / buffering defaults."""
    gen = _device_generation()
    if gen == "v5":
        # 128 MiB VMEM, slow MXU: large tiles, deepest feats pipeline.
        return dict(tile_m_cap=2048, vmem_limit=96 << 20, feats_buffers=4,
                    two_cores=False)
    if gen == "v6":
        # 128 MiB VMEM: large tiles, 3-deep feats pipeline.
        return dict(tile_m_cap=2048, vmem_limit=96 << 20, feats_buffers=3,
                    two_cores=False)
    # v7x (64 MiB VMEM, 2 TensorCores) and unknown -> conservative limits,
    # and make sure the parallel row axis has work for both cores.
    return dict(tile_m_cap=1024, vmem_limit=48 << 20, feats_buffers=3,
                two_cores=True)


def _vmem_estimate(tile_m, H, Dp, feats_buffers, feats_bytes, out_bytes):
    """Rough VMEM footprint (bytes) used to shrink tile_m if needed."""
    return (tile_m * H * 4                                # f32 accumulator
            + feats_buffers * tile_m * H * feats_bytes    # feats pipeline bufs
            + 2 * tile_m * Dp * out_bytes                 # out (double buffer)
            + H * Dp * 2                                  # proj_w bf16
            + 2 * H * 4 + Dp * 4)                         # gamma/beta/bias


def fused_layer_agg_projection(norm_weights, gamma, beta, proj_w, proj_b,
                               feats, *, tile_m=None, out_dtype=jnp.float32):
    """feats: [L, M, H] (f32 or bf16) -> [M, D] out_dtype."""
    L, M, H = feats.shape
    D = proj_w.shape[1]
    cfg = _generation_config()

    # Lane-dense output: pad d_model up to a multiple of 128 (zero columns).
    Dp = _round_up(D, 128)
    if Dp != D:
        proj_w = jnp.pad(proj_w, ((0, 0), (0, Dp - D)))
        proj_b = jnp.pad(proj_b, ((0, Dp - D),))

    # bf16 weights for the MXU (accumulation stays f32 inside the kernel).
    proj_w = proj_w.astype(jnp.bfloat16)

    # ---- Row tile sizing (generation aware, VMEM-budgeted) ----
    feats_bytes = np.dtype(feats.dtype).itemsize
    out_bytes = np.dtype(out_dtype).itemsize
    if tile_m is None:
        tile_m = cfg["tile_m_cap"]
        budget = int(0.85 * cfg["vmem_limit"])
        while tile_m > 256 and _vmem_estimate(
                tile_m, H, Dp, cfg["feats_buffers"], feats_bytes, out_bytes) > budget:
            tile_m //= 2
    # Never bigger than needed; multiple of 8.
    tile_m = max(8, min(tile_m, _round_up(M, 8)))
    # v7x megacore: guarantee >= 2 row tiles so the "parallel" axis can shard
    # across both TensorCores.
    if cfg["two_cores"] and M > 8 and pl.cdiv(M, tile_m) < 2:
        tile_m = max(8, _round_up(pl.cdiv(M, 2), 8))

    m_pad = _round_up(M, tile_m)
    if m_pad != M:
        # Padded rows produce garbage (sliced off below); eps keeps LN finite.
        feats = jnp.pad(feats, ((0, 0), (0, m_pad - M), (0, 0)))

    grid = (m_pad // tile_m, L)

    def _build(feats_buffers, weight_buffers):
        def _spec(shape, index_map, buffers):
            if buffers is None:
                return pl.BlockSpec(shape, index_map)
            return pl.BlockSpec(shape, index_map,
                                pipeline_mode=pl.Buffered(buffers))

        const_map = lambda i, l, nw: (0, 0)
        in_specs = [
            # Constant block index across the whole grid -> resident, no re-DMA.
            _spec((1, H), const_map, weight_buffers),             # gamma
            _spec((1, H), const_map, weight_buffers),             # beta
            _spec((H, Dp), const_map, weight_buffers),            # proj_w
            _spec((1, Dp), const_map, weight_buffers),            # proj_b
            # One layer slice of the row tile per (i, l) step; deep-buffered so
            # the finalize LN+matmul+store burst doesn't stall the DMA stream.
            _spec((1, tile_m, H), lambda i, l, nw: (l, i, 0), feats_buffers),
        ]
        return pl.pallas_call(
            _fused_agg_ln_proj_kernel,
            out_shape=jax.ShapeDtypeStruct((m_pad, Dp), out_dtype),
            grid_spec=pltpu.PrefetchScalarGridSpec(
                num_scalar_prefetch=1,  # norm_weights -> SMEM, first kernel arg
                grid=grid,
                in_specs=in_specs,
                out_specs=pl.BlockSpec((tile_m, Dp), lambda i, l, nw: (i, 0)),
                scratch_shapes=[pltpu.VMEM((tile_m, H), jnp.float32)],
            ),
            compiler_params=pltpu.CompilerParams(
                # Row axis parallel (megacore shard), layer axis is the
                # reduction -> must be "arbitrary".
                dimension_semantics=("parallel", "arbitrary"),
                vmem_limit_bytes=cfg["vmem_limit"],
            ),
        )

    args = (norm_weights,
            gamma.reshape(1, H),
            beta.reshape(1, H),
            proj_w,
            proj_b.reshape(1, Dp),
            feats)

    # Preferred config first; fall back gracefully if pipeline_mode hints are
    # not supported by the installed jax/Mosaic version.
    attempts = [
        (cfg["feats_buffers"], 1),      # deep feats pipeline + single-buffered weights
        (cfg["feats_buffers"], None),   # deep feats pipeline only
        (None, None),                   # default double buffering everywhere
    ]
    last_err = None
    out = None
    for feats_bufs, weight_bufs in attempts:
        try:
            out = jax.block_until_ready(_build(feats_bufs, weight_bufs)(*args))
            break
        except Exception as e:  # pragma: no cover - portability fallback
            last_err = e
            out = None
    if out is None:
        raise last_err

    # Slice off row padding and d_model lane padding.
    return out[:M, :D]


def init_params(key, num_layers, hidden_dim, d_model):
    """Deterministic parameter init mirroring the torch module's __init__."""
    k_w, k_b = jax.random.split(key)
    bound = 1.0 / np.sqrt(hidden_dim)
    return {
        # LayerWeightedFeatures: torch.ones(L) / L
        "layer_weights": jnp.ones((num_layers,), jnp.float32) / num_layers,
        # nn.LayerNorm(hidden_dim) default affine init
        "ln_gamma": jnp.ones((hidden_dim,), jnp.float32),
        "ln_beta": jnp.zeros((hidden_dim,), jnp.float32),
        # nn.Linear(hidden_dim, d_model); stored as [H, D] (= torch weight.T)
        "proj_w": jax.random.uniform(k_w, (hidden_dim, d_model), jnp.float32,
                                     -bound, bound),
        "proj_b": jax.random.uniform(k_b, (d_model,), jnp.float32,
                                     -bound, bound),
    }


def sign_language_translation_forward(params, layer_features,
                                      out_dtype=jnp.float32):
    """Forward of SignLanguageTranslationModel (use_layer_aggregation=True).

    layer_features: [L, B, S, H] — the encoder's per-layer outputs with the
                    final encoder output appended (what the torch code builds
                    before calling self.layer_aggregation).
    returns: [1, B, S, d_model] — the projected features the torch code passes
             to the decoder as `encoder_outputs=projected.unsqueeze(0)`.
    """
    L, B, S, H = layer_features.shape
    # Softmax over the L layer weights (L tiny scalars: kept as JAX glue).
    norm_w = jax.nn.softmax(params["layer_weights"]).astype(jnp.float32)
    # TODO(synk): if the upstream WavLM encoder emits bf16 features, pass them
    # through unchanged (the kernel handles bf16 feats) to halve the dominant
    # HBM read; a standalone cast pass would cancel the win.
    feats = layer_features.reshape(L, B * S, H)
    # TODO(synk): pass out_dtype=jnp.bfloat16 here if the ByteT5 decoder accepts
    # bf16 encoder states; halves the output writeback.
    out = fused_layer_agg_projection(
        norm_w,
        params["ln_gamma"],
        params["ln_beta"],
        params["proj_w"],
        params["proj_b"],
        feats,
        out_dtype=out_dtype,
    )
    D = params["proj_w"].shape[1]
    projected = out.reshape(B, S, D)
    # TODO(synk): ByteT5 decoder is an external pretrained model with no clean
    # Pallas equivalent; we return the projected encoder features it would consume.
    return projected[None, ...]


def reference_forward(params, layer_features):
    """Pure-JAX f32 reference matching the torch semantics."""
    norm_w = jax.nn.softmax(params["layer_weights"])
    weighted = jnp.einsum("l,lbsh->bsh", norm_w, layer_features)
    mean = weighted.mean(-1, keepdims=True)
    var = jnp.square(weighted - mean).mean(-1, keepdims=True)
    normed = (weighted - mean) / jnp.sqrt(var + LN_EPS)
    normed = normed * params["ln_gamma"] + params["ln_beta"]
    proj = normed @ params["proj_w"] + params["proj_b"]
    return proj[None, ...]


if __name__ == "__main__":
    # Small shapes consistent with the module's forward:
    #   encoder_embed_dim * len(group_dims) -> H, bytet5 d_model -> D,
    #   encoder_layers + 1 -> L layer outputs of shape [B, S, H].
    NUM_ENCODER_LAYERS = 4
    L = NUM_ENCODER_LAYERS + 1
    H, D = 32, 16

    key = jax.random.PRNGKey(0)
    k_feat, k_feat2, k_param = jax.random.split(key, 3)
    params = init_params(k_param, L, H, D)

    # Case 1: B*S a multiple of 8.
    B, S = 2, 8
    # TODO(synk): WavLM encoder (extract_features) is an external pretrained
    # model; deterministic synthetic per-layer encoder outputs stand in for it.
    layer_features = jax.random.normal(k_feat, (L, B, S, H), jnp.float32)
    out = jax.block_until_ready(
        sign_language_translation_forward(params, layer_features))
    ref = reference_forward(params, layer_features)
    # bf16 matmul operands (f32 accumulation) -> widened tolerance vs f32 ref.
    np.testing.assert_allclose(np.asarray(out), np.asarray(ref),
                               rtol=5e-2, atol=5e-2)

    # Case 2: B*S not a multiple of the row tile (exercises row padding + slice).
    B2, S2 = 2, 9
    layer_features2 = jax.random.normal(k_feat2, (L, B2, S2, H), jnp.float32)
    out2 = jax.block_until_ready(
        sign_language_translation_forward(params, layer_features2))
    ref2 = reference_forward(params, layer_features2)
    np.testing.assert_allclose(np.asarray(out2), np.asarray(ref2),
                               rtol=5e-2, atol=5e-2)

    print("KERNEL_OK")
</pallas_src>

<mosaic_0001>
module attributes {stable_mosaic.version = 11 : i64} {
  func.func @_fused_agg_ln_proj_kernel(%arg0: i32, %arg1: i32, %arg2: memref<5xf32, #tpu.memory_space<smem>>, %arg3: memref<1x32xf32, #tpu.memory_space<vmem>>, %arg4: memref<1x32xf32, #tpu.memory_space<vmem>>, %arg5: memref<32x128xbf16, #tpu.memory_space<vmem>>, %arg6: memref<1x128xf32, #tpu.memory_space<vmem>>, %arg7: memref<1x8x32xf32, #tpu.memory_space<vmem>>, %arg8: memref<8x128xf32, #tpu.memory_space<vmem>>, %arg9: memref<8x32xf32, #tpu.memory_space<vmem>>) attributes {dimension_semantics = [#tpu.dimension_semantics<parallel>, #tpu.dimension_semantics<arbitrary>], iteration_bounds = array<i64: 2, 5>, scalar_prefetch = 1 : i64, scratch_operands = 1 : i64, tpu.core_type = #tpu.core_type<tc>, window_params = [{pipeline_mode = #tpu.pipeline_mode<synchronous>, transform_indices = @transform_0, window_bounds = array<i64: 1, 32>}, {pipeline_mode = #tpu.pipeline_mode<synchronous>, transform_indices = @transform_1, window_bounds = array<i64: 1, 32>}, {pipeline_mode = #tpu.pipeline_mode<synchronous>, transform_indices = @transform_2, window_bounds = array<i64: 32, 128>}, {pipeline_mode = #tpu.pipeline_mode<synchronous>, transform_indices = @transform_3, window_bounds = array<i64: 1, 128>}, {transform_indices = @transform_4, window_bounds = array<i64: 1, 8, 32>}, {transform_indices = @transform_5, window_bounds = array<i64: 8, 128>}]} {
    %c0_i32 = arith.constant 0 : i32
    %0 = arith.cmpi eq, %arg1, %c0_i32 : i32
    %1 = arith.extui %0 : i1 to i32
    %c0_i32_0 = arith.constant 0 : i32
    %2 = arith.cmpi ne, %1, %c0_i32_0 : i32
    scf.if %2 {
      %c0 = arith.constant 0 : index
      %9 = memref.load %arg2[%c0] : memref<5xf32, #tpu.memory_space<smem>>
      %c0_4 = arith.constant 0 : index
      %c0_5 = arith.constant 0 : index
      %c0_6 = arith.constant 0 : index
      %10 = vector.load %arg7[%c0_4, %c0_5, %c0_6] : memref<1x8x32xf32, #tpu.memory_space<vmem>>, vector<1x8x32xf32>
      %11 = vector.shape_cast %10 : vector<1x8x32xf32> to vector<8x32xf32>
      %12 = vector.broadcast %9 : f32 to vector<8x32xf32>
      %13 = arith.mulf %12, %11 : vector<8x32xf32>
      %c0_7 = arith.constant 0 : index
      %c0_8 = arith.constant 0 : index
      %14 = vector.load %arg9[%c0_7, %c0_8] : memref<8x32xf32, #tpu.memory_space<vmem>>, vector<8x32xf32>
      tpu.vector_store %arg9[%c0_7, %c0_8], %13 {strides = array<i32>} : memref<8x32xf32, #tpu.memory_space<vmem>>, vector<8x32xf32>,
    } else {
    }
    %c0_i32_1 = arith.constant 0 : i32
    %3 = arith.cmpi sgt, %arg1, %c0_i32_1 : i32
    %4 = arith.extui %3 : i1 to i32
    %c0_i32_2 = arith.constant 0 : i32
    %5 = arith.cmpi ne, %4, %c0_i32_2 : i32
    scf.if %5 {
      %c0 = arith.constant 0 : index
      %c0_4 = arith.constant 0 : index
      %9 = vector.load %arg9[%c0, %c0_4] : memref<8x32xf32, #tpu.memory_space<vmem>>, vector<8x32xf32>
      %10 = arith.index_cast %arg1 : i32 to index
      %11 = memref.load %arg2[%10] : memref<5xf32, #tpu.memory_space<smem>>
      %c0_5 = arith.constant 0 : index
      %c0_6 = arith.constant 0 : index
      %c0_7 = arith.constant 0 : index
      %12 = vector.load %arg7[%c0_5, %c0_6, %c0_7] : memref<1x8x32xf32, #tpu.memory_space<vmem>>, vector<1x8x32xf32>
      %13 = vector.shape_cast %12 : vector<1x8x32xf32> to vector<8x32xf32>
      %14 = vector.broadcast %11 : f32 to vector<8x32xf32>
      %15 = arith.mulf %14, %13 : vector<8x32xf32>
      %16 = arith.addf %9, %15 : vector<8x32xf32>
      %c0_8 = arith.constant 0 : index
      %c0_9 = arith.constant 0 : index
      %17 = vector.load %arg9[%c0_8, %c0_9] : memref<8x32xf32, #tpu.memory_space<vmem>>, vector<8x32xf32>
      tpu.vector_store %arg9[%c0_8, %c0_9], %16 {strides = array<i32>} : memref<8x32xf32, #tpu.memory_space<vmem>>, vector<8x32xf32>,
    } else {
    }
    %c4_i32 = arith.constant 4 : i32
    %6 = arith.cmpi eq, %arg1, %c4_i32 : i32
    %7 = arith.extui %6 : i1 to i32
    %c0_i32_3 = arith.constant 0 : i32
    %8 = arith.cmpi ne, %7, %c0_i32_3 : i32
    scf.if %8 {
      %c0 = arith.constant 0 : index
      %c0_4 = arith.constant 0 : index
      %9 = vector.load %arg9[%c0, %c0_4] : memref<8x32xf32, #tpu.memory_space<vmem>>, vector<8x32xf32>
      %cst = arith.constant dense<0.000000e+00> : vector<8xf32>
      %10 = vector.multi_reduction <add>, %9, %cst [1] : vector<8x32xf32> to vector<8xf32>
      %11 = vector.shape_cast %10 : vector<8xf32> to vector<8x1xf32>
      %cst_5 = arith.constant 3.200000e+01 : f32
      %12 = vector.broadcast %cst_5 : f32 to vector<8x1xf32>
      %13 = arith.divf %11, %12 : vector<8x1xf32>
      %14 = vector.broadcast %13 : vector<8x1xf32> to vector<8x32xf32>
      %15 = arith.subf %9, %14 : vector<8x32xf32>
      %16 = arith.mulf %15, %15 : vector<8x32xf32>
      %cst_6 = arith.constant dense<0.000000e+00> : vector<8xf32>
      %17 = vector.multi_reduction <add>, %16, %cst_6 [1] : vector<8x32xf32> to vector<8xf32>
      %18 = vector.shape_cast %17 : vector<8xf32> to vector<8x1xf32>
      %cst_7 = arith.constant 3.200000e+01 : f32
      %19 = vector.broadcast %cst_7 : f32 to vector<8x1xf32>
      %20 = arith.divf %18, %19 : vector<8x1xf32>
      %21 = vector.broadcast %13 : vector<8x1xf32> to vector<8x32xf32>
      %22 = arith.subf %9, %21 : vector<8x32xf32>
      %cst_8 = arith.constant 9.99999974E-6 : f32
      %23 = vector.broadcast %cst_8 : f32 to vector<8x1xf32>
      %24 = arith.addf %20, %23 : vector<8x1xf32>
      %25 = math.rsqrt %24 : vector<8x1xf32>
      %26 = vector.broadcast %25 : vector<8x1xf32> to vector<8x32xf32>
      %27 = arith.mulf %22, %26 : vector<8x32xf32>
      %c0_9 = arith.constant 0 : index
      %c0_10 = arith.constant 0 : index
      %28 = vector.load %arg3[%c0_9, %c0_10] : memref<1x32xf32, #tpu.memory_space<vmem>>, vector<1x32xf32>
      %29 = vector.broadcast %28 : vector<1x32xf32> to vector<8x32xf32>
      %30 = arith.mulf %27, %29 : vector<8x32xf32>
      %c0_11 = arith.constant 0 : index
      %c0_12 = arith.constant 0 : index
      %31 = vector.load %arg4[%c0_11, %c0_12] : memref<1x32xf32, #tpu.memory_space<vmem>>, vector<1x32xf32>
      %32 = vector.broadcast %31 : vector<1x32xf32> to vector<8x32xf32>
      %33 = arith.addf %30, %32 : vector<8x32xf32>
      %34 = arith.truncf %33 : vector<8x32xf32> to vector<8x32xbf16>
      %c0_13 = arith.constant 0 : index
      %c0_14 = arith.constant 0 : index
      %35 = vector.load %arg5[%c0_13, %c0_14] : memref<32x128xbf16, #tpu.memory_space<vmem>>, vector<32x128xbf16>
      %cst_15 = arith.constant dense<0.000000e+00> : vector<8x128xf32>
      %36 = tpu.matmul %34, %35, %cst_15 {dimension_numbers = #tpu.dot_dimension_numbers<[1], [0], [0], [1], [0, 0, 1, 1], [], []>} : vector<8x32xbf16>, vector<32x128xbf16>, vector<8x128xf32> -> vector<8x128xf32>
      %c0_16 = arith.constant 0 : index
      %c0_17 = arith.constant 0 : index
      %37 = vector.load %arg6[%c0_16, %c0_17] : memref<1x128xf32, #tpu.memory_space<vmem>>, vector<1x128xf32>
      %38 = vector.broadcast %37 : vector<1x128xf32> to vector<8x128xf32>
      %39 = arith.addf %36, %38 : vector<8x128xf32>
      %c0_18 = arith.constant 0 : index
      %c0_19 = arith.constant 0 : index
      %40 = vector.load %arg8[%c0_18, %c0_19] : memref<8x128xf32, #tpu.memory_space<vmem>>, vector<8x128xf32>
      tpu.vector_store %arg8[%c0_18, %c0_19], %39 {strides = array<i32>} : memref<8x128xf32, #tpu.memory_space<vmem>>, vector<8x128xf32>,
    } else {
    }
    return
  }
  func.func @transform_0(%arg0: i32, %arg1: i32, %arg2: memref<5xf32, #tpu.memory_space<smem>>) -> (i32, i32) {
    %c0_i32 = arith.constant 0 : i32
    %c0_i32_0 = arith.constant 0 : i32
    %c0_i32_1 = arith.constant 0 : i32
    return %c0_i32, %c0_i32_0 : i32, i32
  }
  func.func @transform_1(%arg0: i32, %arg1: i32, %arg2: memref<5xf32, #tpu.memory_space<smem>>) -> (i32, i32) {
    %c0_i32 = arith.constant 0 : i32
    %c0_i32_0 = arith.constant 0 : i32
    %c0_i32_1 = arith.constant 0 : i32
    return %c0_i32, %c0_i32_0 : i32, i32
  }
  func.func @transform_2(%arg0: i32, %arg1: i32, %arg2: memref<5xf32, #tpu.memory_space<smem>>) -> (i32, i32) {
    %c0_i32 = arith.constant 0 : i32
    %c0_i32_0 = arith.constant 0 : i32
    %c0_i32_1 = arith.constant 0 : i32
    return %c0_i32, %c0_i32_0 : i32, i32
  }
  func.func @transform_3(%arg0: i32, %arg1: i32, %arg2: memref<5xf32, #tpu.memory_space<smem>>) -> (i32, i32) {
    %c0_i32 = arith.constant 0 : i32
    %c0_i32_0 = arith.constant 0 : i32
    %c0_i32_1 = arith.constant 0 : i32
    return %c0_i32, %c0_i32_0 : i32, i32
  }
  func.func @transform_4(%arg0: i32, %arg1: i32, %arg2: memref<5xf32, #tpu.memory_space<smem>>) -> (i32, i32, i32) {
    %c0_i32 = arith.constant 0 : i32
    %c0_i32_0 = arith.constant 0 : i32
    return %arg1, %arg0, %c0_i32 : i32, i32, i32
  }
  func.func @transform_5(%arg0: i32, %arg1: i32, %arg2: memref<5xf32, #tpu.memory_space<smem>>) -> (i32, i32) {
    %c0_i32 = arith.constant 0 : i32
    %c0_i32_0 = arith.constant 0 : i32
    return %arg0, %c0_i32 : i32, i32
  }
}

</mosaic_0001>

<bundles_post_ra>
// kernel: tpu_custom_call.1
= control target key start
LH: loop header
LB: loop body
LE: loop exit
PB: predicated region body
PF: predicated region fallthrough
CT: control target
= control target key end

     0   :  { %s860_s21 = smov [#allocation4]   ;;  %s1134_s0 = inlined_call_operand.hbm [shape: f32[5], index: 0, kind: input, shape index: {}]   ;;  %s1135_s1 = inlined_call_operand.vmem [shape: f32[1,32], index: 1, kind: input, shape index: {}]   ;;  %s1136_s2 = inlined_call_operand.vmem [shape: f32[1,32], index: 2, kind: input, shape index: {}]   ;;  %s1137_s3 = inlined_call_operand.hbm [shape: bf16[32,128], index: 3, kind: input, shape index: {}]   ;;  %s1138_s4 = inlined_call_operand.vmem [shape: f32[1,128], index: 4, kind: input, shape index: {}]   ;;  %s1139_s5 = inlined_call_operand.hbm [shape: f32[5,16,32], index: 5, kind: input, shape index: {}]   ;;  %s1140_s6 = inlined_call_operand.hbm [shape: f32[16,128], index: 6, kind: output, shape index: {}]  }
   0x1   :  { %1148 = sst [smem:[#allocation20_spill]] %s1135_s1 }
   0x2   :  { %1149 = sst [smem:[#allocation21_spill]] %s1136_s2 }
   0x3   :  { %1150 = sst [smem:[#allocation22_spill]] %s1137_s3 }
   0x4   :  { %1151 = sst [smem:[#allocation23_spill]] %s1138_s4 }
   0x5   :  { %1152 = sst [smem:[#allocation24_spill]] %s1140_s6 }
   0x6   :  { %12 = dma.hbm_to_smem %s1134_s0, 16, %s860_s21, [#allocation3] }
   0x7   :  { %802 = dma.done.wait [#allocation3], 16 }
   0x8   :  { %803 = vsyncadd [#allocation3], 4294967280 }
   0x9   :  { %14 = sfence }
   0xa   :  { %15 = vsyncpa [#allocation6], 0 }
   0xb   :  { %16 = vsyncpa [#allocation9], 0 }
   0xc   :  { %18 = vsyncpa [#allocation9 + $0x1], 0 }
   0xd   :  { %19 = vsyncpa [#allocation7], 0 }
   0xe   :  { %21 = vsyncpa [#allocation7 + $0x1], 0  ;;  %s906_s24 = smov 0   ;;  %s908_s25 = smov 0  }
   0xf   :  { %s910_s26 = smov 0   ;;  %s912_s27 = smov 0  }
  0x10   :  { %s914_s28 = smov 0   ;;  %s916_s29 = smov 0  }
  0x11   :  { %s918_s0 = smov 0   ;;  %s920_s30 = smov 0  }
  0x12   :  { %s922_s7 = smov 0   ;;  %s924_s8 = smov 0  }
  0x13   :  { %s926_s9 = smov 0  }
  0x14 LB: > { %1153 = sst [smem:[#allocation15_spill]] %s818_s24  ;;  %s512_s10 = sadd.s32 4294967295, %s858_s9   ;;  %s858_s9 = sphi %s926_s9, %s27_s9   ;;  %s854_s8 = sphi %s924_s8, %s1186_s8   ;;  %s850_s7 = sphi %s922_s7, %s1185_s7   ;;  %s846_s30 = sphi %s920_s30, %s1184_s30   ;;  %s842_s0 = sphi %s918_s0, %s1183_s0   ;;  %s838_s29 = sphi %s916_s29, %s1182_s29   ;;  %s834_s28 = sphi %s914_s28, %s1181_s28   ;;  %s830_s27 = sphi %s912_s27, %s1180_s27   ;;  %s826_s26 = sphi %s910_s26, %s1179_s26   ;;  %s822_s25 = sphi %s908_s25, %s1178_s25   ;;  %s818_s24 = sphi %s906_s24, %s1177_s24  }
  0x15   : > { %1154 = sst [smem:[#allocation16_spill]] %s846_s30  ;;  %s513_s11 = sadd.s32 4294967294, %s858_s9  }
  0x16   : > { %p145_p0 = scmp.ne.s32.totalorder %s834_s28, %s830_s27  ;;  %p962_p1 = scmp.eq.s32.totalorder %s512_s10, 0 }
  0x17   : > { %p168_p2 = scmp.ne.s32.totalorder %s826_s26, %s822_s25  ;;  %p169_p3 = scmp.eq.s32.totalorder %s512_s10, 9 }
  0x18   : > { %p970_p4 = por %p962_p1, %p145_p0  ;;  %p174_p5 = scmp.ne.s32.totalorder %s822_s25, %s818_s24 }
  0x19   : > { %p976_p6 = por %p169_p3, %p168_p2  ;;  %p175_p7 = scmp.eq.s32.totalorder %s513_s11, 9 }
  0x1a   : > { %p514_p8 = scmp.ge.s32.totalorder %s858_s9, 1  ;;  %p182_p9 = scmp.lt.s32.totalorder %s858_s9, 11 }
  0x1b   : > { %s1157_s14 = scalar_select %p976_p6, 1, 0 }
  0x1c   : > { %p982_p10 = por %p175_p7, %p174_p5  ;;  %p986_p11 = pnand %p514_p8, %p182_p9 }
  0x1d   : > { %1158 = sst [smem:[#allocation17_spill]] %s1157_s14  ;;  %s861_s17 = smov [#allocation5]  }
  0x1e   : > { %s1159_s15 = scalar_select %p982_p10, 1, 0 }
  0x1f   : > { %s200_s18 = sshll.u32 %s861_s17, 4  ;;  %p556_p12 = pneg %p986_p11  ;;  %s201_s18 = int_to_ptr.vmem [resolvable:$true] %s200_s18 }
  0x20   : > { %1160 = sst [smem:[#allocation18_spill]] %s1159_s15  ;;  %s689_s19 = scalar_lea.vmem %s201_s18, 256 }
  0x21   : > { %p557_p13 = pnand %p556_p12, %p962_p1  ;;  %p690_p2 = scmp.ne.s32.totalorder %s201_s18, %s689_s19 }
  0x22   : > { %p697_p7 = scmp.lt.s32.totalorder %s201_s18, %s201_s18  ;;  %p698_p6 = scmp.lt.s32.totalorder %s689_s19, %s689_s19 }
  0x23   : > { %p680_p0 = pneg %p557_p13 }
  0x24   : > { %p699_p10 = por %p698_p6, %p697_p7 }
  0x25   : > { %p692_p3 = pnand %p690_p2, %p680_p0 }
  0x27   : > { %p693_p5 = pneg %p692_p3 }
  0x29   : > { %p700_p8 = pnand %p699_p10, %p693_p5 }
  0x2b   : > { %703 = shalt.err (!%p700_p8)
}
  0x2c   : > { %s862_s20 = smov 64   ;;  %s863_s21 = smov 4  }
  0x2d   : > { %s1162_s3 = sld [smem:[#allocation22_spill]]  ;;  %s36_s27 = sadd.s32 1, %s850_s7 }
  0x2e   : > { %s39_s10 = sadd.s32 1, %s854_s8  ;;  %p37_p6 = scmp.ge.s32.totalorder %s36_s27, 5 }
  0x2f   : > { %s132_s11 = sadd.s32 1, %s838_s29  ;;  %p139_p9 = scmp.ne.s32.totalorder %s838_s29, %s834_s28 }
  0x30   : > { %p140_p10 = scmp.eq.s32.totalorder %s858_s9, 0  ;;  %s1188_s27 = smov (%p37_p6, %s36_s27), 0 }
  0x31   : > { %1163 = sst [smem:[#allocation19_spill]] %s1188_s27  ;;  %s1190_s10 = smov (!%p37_p6, %s39_s10), %s854_s8 }
  0x32   : > { %s127_s17 = ssub.s32 %s850_s7, %s1188_s27  ;;  %p1008_p12 = por %p140_p10, %p139_p9 }
  0x33   : > { %559 = dma.hbm_to_vmem [thread:$0]  (!%p557_p13), %s1162_s3, 256, %s201_s18, [#allocation6], %s862_s20, %s862_s20, %s863_s21  }
  0x34   : > { %p41_p13 = scmp.ge.s32.totalorder %s1190_s10, 2  ;;  %s158_s18 = sadd.s32 1, %s826_s26 }
  0x35   : > { %p569_p0 = scmp.lt.s32.totalorder %s858_s9, 10  ;;  %s217_s20 = sand.u32 1, %s838_s29  }
  0x36   : > { %s1192_s10 = smov (%p41_p13, %s1190_s10), 0  ;;  %s517_s21 = sshll.u32 %s217_s20, 3 }
  0x37   : > { %s128_s22 = ssub.s32 %s854_s8, %s1192_s10  ;;  %s518_s3 = sshll.u32 %s850_s7, 1 }
  0x38   : > { %s129_s23 = sor.u32 %s128_s22, %s127_s17  ;;  %p156_p2 = scmp.eq.s32.totalorder %s128_s22, 0 }
  0x39   : > { %p130_p3 = scmp.eq.s32.totalorder %s129_s23, 0  ;;  %s226_s24 = sadd.s32 %s854_s8, %s518_s3 }
  0x3a   : > { %s1021_s27 = scalar_select %p156_p2, %s826_s26, %s158_s18  }
  0x3b   : > { %s1024_s15 = scalar_select %p130_p3, %s838_s29, %s132_s11  }
  0x3c   : > { %s221_s6 = scalar_lea.vmem [#allocation8], %s517_s21  ;;  %s519_s30 = sshll.u32 %s226_s24, 7 }
  0x3d   : > { %s230_s14 = sshll.u32 %s221_s6, 4  ;;  %s228_s1 = scalar_lea.hbm %s1139_s5, %s519_s30  ;;  %s231_s14 = int_to_ptr.vmem [resolvable:$true] %s230_s14 }
  0x3e   : > { %p1034_p5 = pnand %p569_p0, %p1008_p12  ;;  %s218_s18 = scalar_lea.sflag [#allocation9], %s217_s20 }
  0x3f   : > { %s717_s11 = scalar_lea.vmem %s231_s14, 128  ;;  %s864_s3 = smov [#allocation8]  }
  0x40   : > { %p706_p7 = pneg %p1034_p5  ;;  %p718_p8 = scmp.ne.s32.totalorder %s231_s14, %s717_s11 }
  0x41   : > { %s722_s6 = sshll.u32 %s864_s3, 4  ;;  %s723_s6 = int_to_ptr.vmem [resolvable:$false] %s722_s6 }
  0x42   : > { %p720_p6 = pnand %p718_p8, %p706_p7  ;;  %s724_s24 = scalar_lea.vmem %s723_s6, 256 }
  0x43   : > { %p725_p10 = scmp.lt.s32.totalorder %s231_s14, %s723_s6  ;;  %p726_p13 = scmp.lt.s32.totalorder %s724_s24, %s717_s11 }
  0x44   : > { %p721_p9 = pneg %p720_p6 }
  0x45   : > { %p727_p2 = por %p726_p13, %p725_p10 }
  0x47   : > { %p728_p3 = pnand %p727_p2, %p721_p9 }
  0x49   : > { %731 = shalt.err (!%p728_p3)
}
  0x4a   : > { %563 = dma.hbm_to_vmem [thread:$0]  (!%p1034_p5), %s228_s1, 128, %s231_s14, %s218_s18  }
  0x4b   : > { %239 = sbr.rel (%p986_p11) target bundleno = 653 (0x28d), region = 40 }
  0x50   : > { %805 = dma.done.wait (%p962_p1), [#allocation6], 256  }
  0x51   : > { %807 = vsyncadd (%p962_p1), [#allocation6], 4294967040  ;;  %s245_s2 = sand.u32 1, %s834_s28  }
  0x52   : > { %s522_s4 = sshll.u32 %s245_s2, 3  ;;  %s246_s30 = scalar_lea.sflag [#allocation9], %s245_s2 }
  0x53   : > { %s249_s19 = scalar_lea.vmem [#allocation8], %s522_s4 }
  0x54   : > { %809 = dma.done.wait (%p970_p4), %s246_s30, 128  }
  0x55   : > { %811 = vsyncadd (%p970_p4), %s246_s30, 4294967168  ;;  %s273_s1 = sand.u32 1, %s822_s25   ;;  %p524_p1 = scmp.ne.s32.totalorder %s842_s0, 0 }
  0x56   : > { %s1056_s14 = sshll.u32 %s273_s1, 3  ;;  %s281_s16 = sld [smem:[#allocation4]] (!%p524_p1) }
  0x57   : > { %s275_s12 = scalar_lea.vmem [#allocation10], %s1056_s14  ;;  %280 = sbr.rel (%p524_p1) target bundleno = 96 (0x60), region = 52 }
  0x5c   : > { %v282_v0 = vld [vmem:[%s249_s19] sm:$0xff]  ;;  %v283_v1 = vstv %s281_s16  ;;  %vm285_vm0 = vcmask 261120  }
  0x5d   : > { %v284_v2 = vmul.f32 %v283_v1, %v282_v0 }
  0x5f   : > { %286 = vst.msk [vmem:[#allocation2] sm:$0xff] %vm285_vm0, %v284_v2 }
  0x60 PF: > { %p525_p4 = scmp.le.s32.totalorder %s842_s0, 0 }
  0x61   : > { %s292_s13 = sld [smem:[#allocation4 + %s842_s0]] (!%p525_p4) }
  0x62   : > { %290 = sbr.rel (%p525_p4) target bundleno = 109 (0x6d), region = 56 }
  0x67   : > { %v293_v3 = vld [vmem:[%s249_s19] sm:$0xff]  ;;  %v294_v5 = vstv %s292_s13  ;;  %vm297_vm1 = vcmask 261120  }
  0x68   : > { %v291_v4 = vld [vmem:[#allocation2] sm:$0xff]  ;;  %v295_v6 = vmul.f32 %v294_v5, %v293_v3 }
  0x6a   : > { %v296_v7 = vadd.f32 %v295_v6, %v291_v4 }
  0x6c   : > { %298 = vst.msk [vmem:[#allocation2] sm:$0xff] %vm297_vm1, %v296_v7 }
  0x6d PF: > { %p526_p11 = scmp.ne.s32.totalorder %s842_s0, 4 }
  0x6e   : > { %s1166_s21 = sld [smem:[#allocation20_spill]] (!%p526_p11) }
  0x6f   : > { %302 = sbr.rel (%p526_p11) target bundleno = 626 (0x272), region = 60  ;;  %s1167_s17 = sld [smem:[#allocation21_spill]] (!%p526_p11) }
  0x70   : > { %s1168_s3 = sld [smem:[#allocation23_spill]] (!%p526_p11) }
  0x74   : > { %v303_v8 = vld [vmem:[#allocation2] sm:$0xff]  ;;  %vm304_vm2 = vcmask 261120   ;;  %v666_v15 = vld [vmem:[#allocation5 + $0x8] sm:$0xff]   ;;  %v865_v16 = vmov 0.0   ;;  %vm866_vm3 = vmmov 0   ;;  %v667_v17 = vld [vmem:[#allocation5] sm:$0xff]  }
  0x75   : > { %v305_v9 = vsel %vm304_vm2, %v303_v8, 0.0  ;;  %540 = vmatprep.subr.bf16.mxu0 %v865_v16  ;;  %544 = vmatprep.mubr.msk.bf16.mxu0 %vm866_vm3, %v865_v16  ;;  %v527_v22 = vld [vmem:[%s1166_s21] ss:$0 sm:$0xff] }
  0x76   : > { %306 = vadd.xlane.f32.xlu0 %v305_v9  ;;  %541 = vmatpush3.bf16.msra.mxu0 %v666_v15  ;;  %v528_v24 = vld [vmem:[%s1167_s17] ss:$0 sm:$0xff] }
  0x77   : > { %542 = vmatprep.subr.bf16.mxu0 %v865_v16  ;;  %v529_v28 = vld [vmem:[%s1168_s3] ss:$0 sm:$0xff] }
  0x7a   : > { %543 = vmatpush3.bf16.msra.mxu0 %v667_v17 }
  0xff   : > { %v307_v10 = vpop.xlane.xlu0 %306 }
 0x100   : > { %v309_v11 = vmul.f32 0.03125, %v307_v10 }
 0x102   : > { %v310_v12 = vsub.f32 %v303_v8, %v309_v11 }
 0x104   : > { %v311_v13 = vmul.f32 %v310_v12, %v310_v12 }
 0x106   : > { %v312_v14 = vsel %vm304_vm2, %v311_v13, 0.0 }
 0x107   : > { %313 = vadd.xlane.f32.xlu0 %v312_v14 }
 0x190   : > { %v314_v18 = vpop.xlane.xlu0 %313 }
 0x191   : > { %v315_v19 = vmul.f32 0.03125, %v314_v18 }
 0x193   : > { %v316_v20 = vadd.f32 1e-05, %v315_v19 }
 0x195   : > { %668 = vrsqrt.f32 %v316_v20 }
 0x1a2   : > { %v669_v21 = vpop.eup %668 }
 0x1a3   : > { %v318_v23 = vmul.f32 %v669_v21, %v310_v12 }
 0x1a5   : > { %v326_v25 = vmul.f32 %v527_v22, %v318_v23 }
 0x1a7   : > { %v334_v26 = vadd.f32 %v528_v24, %v326_v25 }
 0x1a9   : > { %v335_v27 = vpack.c.bf16 %v334_v26, %v334_v26 }
 0x1ab   : > { %545 = vmatmul.mubr.msk.bf16.vlgmr.msra.gmra.mxu0 %vm304_vm2, %v335_v27 }
 0x26b   : > { %v396_v29 = vpop.f32.mrf.mxu0 }
 0x26c   : > { %v397_v30 = vadd.f32 %v529_v28, %v396_v29 }
 0x26d   : > { %v546_v31 = vpop.f32.mrf.mxu0 }
 0x26e   : > { %402 = vst [vmem:[%s275_s12] sm:$0xff] %v397_v30 }
 0x26f   : > { %v399_v32 = vpop.f32.mrf.mxu0 }
 0x271   : > { %v547_v33 = vpop.f32.mrf.mxu0 }
 0x272 PF: > { %s1169_s6 = sld [smem:[#allocation16_spill]]  ;;  %s417_s13 = sshll.u32 %s275_s12, 4  ;;  %s418_s13 = int_to_ptr.vmem [resolvable:$true] %s417_s13 }
 0x273   : > { %s1170_s24 = sld [smem:[#allocation17_spill]]  ;;  %s404_s0 = scalar_lea.sflag [#allocation7], %s273_s1 }
 0x274   : > { %s1171_s19 = sld [smem:[#allocation24_spill]]  ;;  %s732_s20 = scalar_lea.vmem %s418_s13, 128 }
 0x275   : > { %p733_p12 = scmp.ne.s32.totalorder %s418_s13, %s732_s20  ;;  %s867_s21 = smov [#allocation10]  }
 0x276   : > { %s736_s22 = sshll.u32 %s867_s21, 4  ;;  %s737_s22 = int_to_ptr.vmem [resolvable:$false] %s736_s22 }
 0x277   : > { %s738_s23 = scalar_lea.vmem %s737_s22, 256  ;;  %p739_p8 = scmp.lt.s32.totalorder %s418_s13, %s737_s22 }
 0x278   : > { %s534_s2 = sshll.u32 %s1169_s6, 7  ;;  %p740_p6 = scmp.lt.s32.totalorder %s738_s23, %s732_s20 }
 0x279   : > { %p1172_p0 = scmp.ne.s32.totalorder %s1170_s24, 0 }
 0x27a   : > { %s415_s16 = scalar_lea.hbm %s1171_s19, %s534_s2  ;;  %p741_p9 = por %p740_p6, %p739_p8 }
 0x27b   : > { %p734_p5 = pnand %p733_p12, %p1172_p0 }
 0x27d   : > { %p735_p7 = pneg %p734_p5 }
 0x27f   : > { %p742_p10 = pnand %p741_p9, %p735_p7 }
 0x281   : > { %745 = shalt.err (!%p742_p10)
}
 0x282   : > { %s746_s17 = scalar_lea.hbm %s415_s16, 128  ;;  %s750_s12 = scalar_lea.hbm %s1171_s19, 256 }
 0x283   : > { %p747_p13 = scmp.ne.s32.totalorder %s415_s16, %s746_s17  ;;  %p751_p1 = scmp.lt.s32.totalorder %s415_s16, %s1171_s19 }
 0x284   : > { %p752_p4 = scmp.lt.s32.totalorder %s750_s12, %s746_s17 }
 0x285   : > { %p748_p2 = pnand %p747_p13, %p1172_p0 }
 0x286   : > { %p753_p11 = por %p752_p4, %p751_p1 }
 0x287   : > { %p749_p3 = pneg %p748_p2 }
 0x289   : > { %p754_p12 = pnand %p753_p11, %p749_p3 }
 0x28b   : > { %757 = shalt.err (!%p754_p12)
}
 0x28c   : > { %554 = dma.vmem_to_hbm [thread:$0]  (%p1172_p0), %s418_s13, 128, %s415_s16, %s404_s0  }
 0x28d PF: > { %s1173_s3 = sld [smem:[#allocation15_spill]]  ;;  %p571_p5 = scmp.ge.s32.totalorder %s858_s9, 2 }
 0x28e   : > { %s1174_s6 = sld [smem:[#allocation18_spill]] }
 0x293   : > { %s429_s2 = sand.u32 1, %s1173_s3  }
 0x294   : > { %p1175_p7 = scmp.ne.s32.totalorder %s1174_s6, 0  ;;  %s430_s4 = scalar_lea.sflag [#allocation7], %s429_s2 }
 0x296   : > { %p565_p8 = pnand %p571_p5, %p1175_p7 }
 0x298   : > { %p566_p6 = pneg %p565_p8 }
 0x29a   : > { %813 = dma.done.wait (%p566_p6), %s430_s4, 128  }
 0x29b   : > { %815 = vsyncadd (%p566_p6), %s430_s4, 4294967168  ;;  %s27_s9 = sadd.s32 1, %s858_s9   ;;  %s1176_s16 = sld [smem:[#allocation19_spill]] }
 0x29c   : > { %p24_p9 = scmp.ge.s32.totalorder %s27_s9, 12   ;;  %s1177_s24 = smov %s822_s25 }
 0x29d   : > { %s1178_s25 = smov %s826_s26  ;;  %s1179_s26 = smov %s1021_s27 }
 0x29e   : > { %s1180_s27 = smov %s834_s28  ;;  %s1181_s28 = smov %s838_s29 }
 0x29f   : > { %s1182_s29 = smov %s1024_s15  ;;  %s1183_s0 = smov %s850_s7 }
 0x2a0   : > { %s1184_s30 = smov %s854_s8  ;;  %s1186_s8 = smov %s1192_s10 }
 0x2a1   : > { %s1185_s7 = smov %s1176_s16  ;;  %26 = sbr.rel (!%p24_p9) target bundleno = 20 (0x14), region = 102 }
 0x2a6   :  { %435 = vsyncpa [#allocation6], 1 }
 0x2a7   :  { %437 = vsyncpa [#allocation6 + $0x1], 1 }
 0x2a8   :  { %438 = vsyncpa [#allocation9], 1 }
 0x2a9   :  { %440 = vsyncpa [#allocation9 + $0x1], 1 }
 0x2aa   :  { %441 = vsyncpa [#allocation7], 1 }
 0x2ab   :  { %443 = vsyncpa [#allocation7 + $0x1], 1 }

</bundles_post_ra>
